<compile_context>
chip_gen: v7x
topology: tpu7x:2x2x1
jax: 0.10.0
libtpu: 0.0.40
codegen_flags: <defaults>
</compile_context>

<pallas_src>
import functools
import math

import jax
import jax.numpy as jnp
from jax.experimental import pallas as pl
from jax.experimental.pallas import tpu as pltpu


_INV_SQRT2 = 1.0 / math.sqrt(2.0)


# --------------------------------------------------------------------------
# Shared epilogue: f32 LayerNorm (eps=1e-5) + exact-erf GELU.
# --------------------------------------------------------------------------
def _ln_gelu(h, gamma, beta, *, h_real, h_pad):
    """LayerNorm over the real hidden width, then exact (erf) GELU, in f32.

    Padded lanes of `h` are exactly zero (zero-padded w1 columns and b1), so
    the mean needs no mask; only the (h - mu) residual used for the variance
    is masked.  Padded gamma/beta are zero, so padded output lanes stay zero.
    """
    inv_h = 1.0 / float(h_real)
    mu = jnp.sum(h, axis=-1, keepdims=True) * inv_h
    d = h - mu
    if h_real != h_pad:  # static check: skip the iota/mask entirely if aligned
        lane = jax.lax.broadcasted_iota(jnp.int32, h.shape, h.ndim - 1)
        d = jnp.where(lane < h_real, d, 0.0)
    var = jnp.sum(d * d, axis=-1, keepdims=True) * inv_h
    hn = d * jax.lax.rsqrt(var + 1e-5) * gamma + beta
    # Exact (erf) GELU == PyTorch nn.GELU() default; Dropout is identity (eval).
    # TODO(synk): on v5e, jax.nn.gelu(approximate=True) would move the
    # transcendental onto the otherwise-idle EUP slot but changes numerics.
    return 0.5 * hn * (1.0 + jax.lax.erf(hn * _INV_SQRT2))


# --------------------------------------------------------------------------
# Kernel bodies
# --------------------------------------------------------------------------
def _fused_kernel(x_ref, w1_ref, b1_ref, g_ref, be_ref, w2_ref, b2_ref, o_ref,
                  *, h_real, h_pad):
    """Grid: (batch tile i [parallel],).  All weights resident."""
    h = jnp.dot(x_ref[...], w1_ref[...], preferred_element_type=jnp.float32)
    h = h + b1_ref[...]
    hg = _ln_gelu(h, g_ref[...], be_ref[...], h_real=h_real, h_pad=h_pad)
    out = jnp.dot(hg.astype(w2_ref.dtype), w2_ref[...],
                  preferred_element_type=jnp.float32)
    o_ref[...] = (out + b2_ref[...]).astype(o_ref.dtype)


def _w2_tiled_kernel(x_ref, w1_ref, b1_ref, g_ref, be_ref, w2_ref, b2_ref,
                     o_ref, hg_ref, *, h_real, h_pad):
    """Grid: (batch tile i [parallel], w2 column tile j [arbitrary])."""

    @pl.when(pl.program_id(1) == 0)
    def _():
        # Linear 1 + LayerNorm + GELU once per batch tile; cached in a
        # compute-dtype scratch (cast once here, reused for every j).
        h = jnp.dot(x_ref[...], w1_ref[...], preferred_element_type=jnp.float32)
        h = h + b1_ref[...]
        hg = _ln_gelu(h, g_ref[...], be_ref[...], h_real=h_real, h_pad=h_pad)
        hg_ref[...] = hg.astype(hg_ref.dtype)

    # Linear 2 on this column tile: (TB, Hp) @ (Hp, TN) + (1, TN).
    out = jnp.dot(hg_ref[...], w2_ref[...], preferred_element_type=jnp.float32)
    o_ref[...] = (out + b2_ref[...]).astype(o_ref.dtype)


def _hidden_kernel(x_ref, w1_ref, b1_ref, g_ref, be_ref, hg_ref, acc_ref,
                   *, h_real, h_pad):
    """Grid: (batch tile i [parallel], D tile k [arbitrary]).  w1 streamed."""
    k = pl.program_id(1)

    @pl.when(k == 0)
    def _():
        acc_ref[...] = jnp.zeros_like(acc_ref)

    acc_ref[...] += jnp.dot(x_ref[...], w1_ref[...],
                            preferred_element_type=jnp.float32)

    @pl.when(k == pl.num_programs(1) - 1)
    def _():
        h = acc_ref[...] + b1_ref[...]
        hg = _ln_gelu(h, g_ref[...], be_ref[...], h_real=h_real, h_pad=h_pad)
        hg_ref[...] = hg.astype(hg_ref.dtype)


def _out_kernel(hg_ref, w2_ref, b2_ref, o_ref):
    """Grid: (batch tile i, w2 column tile j).  out = hg @ w2 + b2."""
    out = jnp.dot(hg_ref[...], w2_ref[...], preferred_element_type=jnp.float32)
    o_ref[...] = (out + b2_ref[...]).astype(o_ref.dtype)


# --------------------------------------------------------------------------
# Host-side helpers
# --------------------------------------------------------------------------
def _round_up(n, m):
    return (n + m - 1) // m * m


def _pad2(a, rows, cols, dtype=None):
    if dtype is not None and a.dtype != jnp.dtype(dtype):
        a = a.astype(dtype)
    pr, pc = rows - a.shape[0], cols - a.shape[1]
    if pr or pc:
        a = jnp.pad(a, ((0, pr), (0, pc)))
    return a


def _pick_tile(full):
    for t in (512, 384, 256, 128):
        if full % t == 0:
            return t
    return full


def _vmem_cap_bytes():
    try:
        return int(pltpu.get_tpu_info().vmem_capacity_bytes)
    except Exception:
        return 64 << 20  # conservative fallback (v7x per-core size)


def _spec(block_shape, index_map, buffers=None):
    """BlockSpec with an optional buffer-count hint (graceful fallback)."""
    if buffers is None:
        return pl.BlockSpec(block_shape, index_map)
    try:
        return pl.BlockSpec(block_shape, index_map,
                            pipeline_mode=pl.Buffered(buffers))
    except Exception:  # older jax without pipeline_mode: correctness unchanged
        return pl.BlockSpec(block_shape, index_map)


# --------------------------------------------------------------------------
# Public wrapper
# --------------------------------------------------------------------------
def mlp_expert(x, params, *, compute_dtype=jnp.bfloat16, batch_tile=None,
               n_tile=None, k_tile=None, force_path=None):
    """MLPExpert forward.  Accepts (B, S, D) or (B, D); returns (B, H)."""
    out_dtype = x.dtype
    if x.ndim == 3:
        # Mean-pool over the sequence axis in the wrapper (PyTorch skips it for
        # 2-D inputs) so the kernel never has to hold (B, S, D) in VMEM.
        x = jnp.mean(x.astype(jnp.float32), axis=1)
    B, D = x.shape
    H = params["w2"].shape[1]

    cd = jnp.dtype(compute_dtype)
    f32 = jnp.float32

    # Lane/sublane-aligned padded sizes and tile choices.
    D_pad = _round_up(D, 128)
    H_pad = _round_up(H, 128)
    TB = batch_tile or min(_round_up(B, 8), 256)   # 256 fills the MXU M dim
    B_pad = _round_up(B, TB)
    TN = n_tile or _pick_tile(H_pad)
    TK = k_tile or _pick_tile(D_pad)
    if H_pad % TN or D_pad % TK or TB % 8:
        raise ValueError("tile sizes must divide the padded dims (and TB % 8 == 0)")
    n_b, n_j, n_k = B_pad // TB, H_pad // TN, D_pad // TK

    # Zero-pad operands (gamma/beta padded with 0 so padded lanes stay 0).
    x_p = _pad2(x, B_pad, D_pad, cd)
    w1_p = _pad2(params["w1"], D_pad, H_pad, cd)
    w2_p = _pad2(params["w2"], H_pad, H_pad, cd)
    b1_p = _pad2(params["b1"], 1, H_pad, f32)
    g_p = _pad2(params["gamma"], 1, H_pad, f32)
    be_p = _pad2(params["beta"], 1, H_pad, f32)
    b2_p = _pad2(params["b2"], 1, H_pad, f32)

    # --- Generation-aware VMEM budget and path selection ---------------------
    vmem_budget = int(_vmem_cap_bytes() * 0.85)   # headroom for Mosaic scratch
    out_isz = jnp.dtype(out_dtype).itemsize

    w1_bytes = D_pad * H_pad * cd.itemsize                      # Buffered(1)
    w2_bytes = H_pad * H_pad * cd.itemsize
    bias_bytes = 4 * H_pad * 4
    x_tile_bytes = 2 * TB * D_pad * cd.itemsize
    hg_scratch_bytes = TB * H_pad * cd.itemsize

    fused_est = (w1_bytes + w2_bytes + bias_bytes + x_tile_bytes
                 + 2 * TB * H_pad * out_isz)
    tiled_est = (w1_bytes + bias_bytes + x_tile_bytes + hg_scratch_bytes
                 + 3 * (H_pad * TN * cd.itemsize + TN * 4)
                 + 2 * TB * TN * out_isz)
    split1_est = (2 * (TB * TK + TK * H_pad) * cd.itemsize + bias_bytes
                  + TB * H_pad * 4 + 2 * TB * H_pad * cd.itemsize)
    split2_est = (2 * TB * H_pad * cd.itemsize
                  + 2 * (H_pad * TN * cd.itemsize + TN * 4)
                  + 2 * TB * TN * out_isz)

    if force_path is not None:
        path = force_path
    elif fused_est <= min(16 << 20, vmem_budget):
        path = "fused"
    elif tiled_est <= vmem_budget:
        path = "tiled"
    else:
        path = "split"

    def _limit(est):
        return int(min(vmem_budget, max(32 << 20, int(1.5 * est))))

    flops_total = 2 * B_pad * D_pad * H_pad + 2 * B_pad * H_pad * H_pad

    # ---------------------------------------------------------------- fused --
    if path == "fused":
        out = pl.pallas_call(
            functools.partial(_fused_kernel, h_real=int(H), h_pad=int(H_pad)),
            out_shape=jax.ShapeDtypeStruct((B_pad, H_pad), out_dtype),
            grid_spec=pltpu.PrefetchScalarGridSpec(
                num_scalar_prefetch=0,
                grid=(n_b,),
                in_specs=[
                    _spec((TB, D_pad), lambda i: (i, 0)),
                    _spec((D_pad, H_pad), lambda i: (0, 0), buffers=1),
                    _spec((1, H_pad), lambda i: (0, 0), buffers=1),
                    _spec((1, H_pad), lambda i: (0, 0), buffers=1),
                    _spec((1, H_pad), lambda i: (0, 0), buffers=1),
                    _spec((H_pad, H_pad), lambda i: (0, 0), buffers=1),
                    _spec((1, H_pad), lambda i: (0, 0), buffers=1),
                ],
                out_specs=pl.BlockSpec((TB, H_pad), lambda i: (i, 0)),
            ),
            compiler_params=pltpu.CompilerParams(
                dimension_semantics=("parallel",),
                vmem_limit_bytes=_limit(fused_est)),
            cost_estimate=pl.CostEstimate(
                flops=flops_total,
                transcendentals=B_pad * H_pad,
                bytes_accessed=(x_p.size * cd.itemsize + w1_p.size * cd.itemsize
                                + w2_p.size * cd.itemsize + 4 * H_pad * 4
                                + B_pad * H_pad * out_isz)),
        )(x_p, w1_p, b1_p, g_p, be_p, w2_p, b2_p)
        return out[:B, :H]

    # ---------------------------------------------------------------- tiled --
    if path == "tiled":
        w2_buf = min(3, n_j)   # extra depth so w2 DMAs land under the long j==0
        out = pl.pallas_call(
            functools.partial(_w2_tiled_kernel, h_real=int(H), h_pad=int(H_pad)),
            out_shape=jax.ShapeDtypeStruct((B_pad, H_pad), out_dtype),
            grid_spec=pltpu.PrefetchScalarGridSpec(
                num_scalar_prefetch=0,
                grid=(n_b, n_j),
                in_specs=[
                    _spec((TB, D_pad), lambda i, j: (i, 0)),
                    _spec((D_pad, H_pad), lambda i, j: (0, 0), buffers=1),
                    _spec((1, H_pad), lambda i, j: (0, 0), buffers=1),
                    _spec((1, H_pad), lambda i, j: (0, 0), buffers=1),
                    _spec((1, H_pad), lambda i, j: (0, 0), buffers=1),
                    _spec((H_pad, TN), lambda i, j: (0, j), buffers=w2_buf),
                    _spec((1, TN), lambda i, j: (0, j), buffers=w2_buf),
                ],
                out_specs=pl.BlockSpec((TB, TN), lambda i, j: (i, j)),
                scratch_shapes=[pltpu.VMEM((TB, H_pad), cd)],  # GELU(LN(.)) cache
            ),
            compiler_params=pltpu.CompilerParams(
                dimension_semantics=("parallel", "arbitrary"),
                vmem_limit_bytes=_limit(tiled_est)),
            cost_estimate=pl.CostEstimate(
                flops=flops_total,
                transcendentals=B_pad * H_pad,
                bytes_accessed=(x_p.size * cd.itemsize + w1_p.size * cd.itemsize
                                + n_b * w2_p.size * cd.itemsize  # w2 per batch tile
                                + 4 * H_pad * 4
                                + B_pad * H_pad * out_isz)),
        )(x_p, w1_p, b1_p, g_p, be_p, w2_p, b2_p)
        return out[:B, :H]

    # ---------------------------------------------------------------- split --
    if path == "split":
        # Kernel 1: hg = GELU(LN(x @ w1 + b1)), w1 streamed in (TK, H_pad) tiles.
        hg = pl.pallas_call(
            functools.partial(_hidden_kernel, h_real=int(H), h_pad=int(H_pad)),
            out_shape=jax.ShapeDtypeStruct((B_pad, H_pad), cd),
            grid_spec=pltpu.PrefetchScalarGridSpec(
                num_scalar_prefetch=0,
                grid=(n_b, n_k),
                in_specs=[
                    _spec((TB, TK), lambda i, k: (i, k)),
                    _spec((TK, H_pad), lambda i, k: (k, 0)),
                    _spec((1, H_pad), lambda i, k: (0, 0), buffers=1),
                    _spec((1, H_pad), lambda i, k: (0, 0), buffers=1),
                    _spec((1, H_pad), lambda i, k: (0, 0), buffers=1),
                ],
                out_specs=pl.BlockSpec((TB, H_pad), lambda i, k: (i, 0)),
                scratch_shapes=[pltpu.VMEM((TB, H_pad), jnp.float32)],  # f32 acc
            ),
            compiler_params=pltpu.CompilerParams(
                dimension_semantics=("parallel", "arbitrary"),
                vmem_limit_bytes=_limit(split1_est)),
            cost_estimate=pl.CostEstimate(
                flops=2 * B_pad * D_pad * H_pad,
                transcendentals=B_pad * H_pad,
                bytes_accessed=(x_p.size * cd.itemsize
                                + n_b * w1_p.size * cd.itemsize
                                + 3 * H_pad * 4
                                + B_pad * H_pad * cd.itemsize)),
        )(x_p, w1_p, b1_p, g_p, be_p)

        # Kernel 2: out = hg @ w2 + b2, column-tiled.
        out = pl.pallas_call(
            _out_kernel,
            out_shape=jax.ShapeDtypeStruct((B_pad, H_pad), out_dtype),
            grid_spec=pltpu.PrefetchScalarGridSpec(
                num_scalar_prefetch=0,
                grid=(n_b, n_j),
                in_specs=[
                    _spec((TB, H_pad), lambda i, j: (i, 0)),
                    _spec((H_pad, TN), lambda i, j: (0, j)),
                    _spec((1, TN), lambda i, j: (0, j)),
                ],
                out_specs=pl.BlockSpec((TB, TN), lambda i, j: (i, j)),
            ),
            compiler_params=pltpu.CompilerParams(
                dimension_semantics=("parallel", "arbitrary"),
                vmem_limit_bytes=_limit(split2_est)),
            cost_estimate=pl.CostEstimate(
                flops=2 * B_pad * H_pad * H_pad,
                transcendentals=0,
                bytes_accessed=(B_pad * H_pad * cd.itemsize
                                + n_b * w2_p.size * cd.itemsize + H_pad * 4
                                + B_pad * H_pad * out_isz)),
        )(hg, w2_p, b2_p)
        return out[:B, :H]

    raise ValueError(f"unknown path: {path!r}")


# --------------------------------------------------------------------------
# Reference, params, demo
# --------------------------------------------------------------------------
def init_params(key, input_size, hidden_size, dtype=jnp.float32):
    """Deterministic synthetic parameters (shapes match the PyTorch module)."""
    k1, k2, k3, k4 = jax.random.split(key, 4)
    s1 = 1.0 / math.sqrt(input_size)
    s2 = 1.0 / math.sqrt(hidden_size)
    return dict(
        w1=jax.random.uniform(k1, (input_size, hidden_size), dtype, -s1, s1),
        b1=jax.random.uniform(k2, (1, hidden_size), dtype, -s1, s1),
        gamma=jnp.ones((1, hidden_size), dtype),
        beta=jnp.zeros((1, hidden_size), dtype),
        w2=jax.random.uniform(k3, (hidden_size, hidden_size), dtype, -s2, s2),
        b2=jax.random.uniform(k4, (1, hidden_size), dtype, -s2, s2),
    )


def mlp_expert_ref(x, params):
    """Pure-JAX reference for sanity checks."""
    if x.ndim == 3:
        x = jnp.mean(x, axis=1)
    h = x @ params["w1"] + params["b1"]
    mu = jnp.mean(h, axis=-1, keepdims=True)
    var = jnp.mean(jnp.square(h - mu), axis=-1, keepdims=True)
    hn = (h - mu) / jnp.sqrt(var + 1e-5) * params["gamma"] + params["beta"]
    hg = 0.5 * hn * (1.0 + jax.lax.erf(hn / math.sqrt(2.0)))
    return hg @ params["w2"] + params["b2"]


if __name__ == "__main__":
    # Case 1: module-sized shapes through the fused (no-column-axis) path,
    # both the f32-exact path and the default bf16 MXU path.
    kx, kp = jax.random.split(jax.random.PRNGKey(0))
    batch, seq, input_size, hidden_size = 2, 8, 32, 32
    x = jax.random.normal(kx, (batch, seq, input_size), dtype=jnp.float32)
    params = init_params(kp, input_size, hidden_size)
    ref = mlp_expert_ref(x, params)

    out_f32 = jax.block_until_ready(
        mlp_expert(x, params, compute_dtype=jnp.float32))
    assert out_f32.shape == (batch, hidden_size)
    assert jnp.allclose(out_f32, ref, atol=1e-4, rtol=1e-4), float(
        jnp.max(jnp.abs(out_f32 - ref)))

    out_bf16 = jax.block_until_ready(mlp_expert(x, params))  # bf16 MXU default
    assert jnp.allclose(out_bf16, ref, atol=5e-2, rtol=5e-2), float(
        jnp.max(jnp.abs(out_bf16 - ref)))

    # Case 2: exercise the w2-column-tiled path (multiple j tiles, hg scratch).
    kx2, kp2 = jax.random.split(jax.random.PRNGKey(1))
    x2 = jax.random.normal(kx2, (4, 256), dtype=jnp.float32)
    params2 = init_params(kp2, 256, 256)
    ref2 = mlp_expert_ref(x2, params2)
    out_tiled = jax.block_until_ready(
        mlp_expert(x2, params2, compute_dtype=jnp.float32,
                   n_tile=128, force_path="tiled"))
    assert jnp.allclose(out_tiled, ref2, atol=5e-4, rtol=5e-4), float(
        jnp.max(jnp.abs(out_tiled - ref2)))

    # Case 3: exercise the large-w1 split path (w1 streamed over D tiles).
    out_split = jax.block_until_ready(
        mlp_expert(x2, params2, compute_dtype=jnp.float32,
                   n_tile=128, k_tile=128, force_path="split"))
    assert jnp.allclose(out_split, ref2, atol=5e-4, rtol=5e-4), float(
        jnp.max(jnp.abs(out_split - ref2)))

    print("KERNEL_OK")
</pallas_src>

<mosaic_0001>
module attributes {stable_mosaic.version = 11 : i64} {
  func.func @_fused_kernel(%arg0: i32, %arg1: memref<8x128xf32, #tpu.memory_space<vmem>>, %arg2: memref<128x128xf32, #tpu.memory_space<vmem>>, %arg3: memref<1x128xf32, #tpu.memory_space<vmem>>, %arg4: memref<1x128xf32, #tpu.memory_space<vmem>>, %arg5: memref<1x128xf32, #tpu.memory_space<vmem>>, %arg6: memref<128x128xf32, #tpu.memory_space<vmem>>, %arg7: memref<1x128xf32, #tpu.memory_space<vmem>>, %arg8: memref<8x128xf32, #tpu.memory_space<vmem>>) attributes {dimension_semantics = [#tpu.dimension_semantics<parallel>], iteration_bounds = array<i64: 1>, scalar_prefetch = 0 : i64, scratch_operands = 0 : i64, tpu.core_type = #tpu.core_type<tc>, window_params = [{transform_indices = @transform_0, window_bounds = array<i64: 8, 128>}, {pipeline_mode = #tpu.pipeline_mode<synchronous>, transform_indices = @transform_1, window_bounds = array<i64: 128, 128>}, {pipeline_mode = #tpu.pipeline_mode<synchronous>, transform_indices = @transform_2, window_bounds = array<i64: 1, 128>}, {pipeline_mode = #tpu.pipeline_mode<synchronous>, transform_indices = @transform_3, window_bounds = array<i64: 1, 128>}, {pipeline_mode = #tpu.pipeline_mode<synchronous>, transform_indices = @transform_4, window_bounds = array<i64: 1, 128>}, {pipeline_mode = #tpu.pipeline_mode<synchronous>, transform_indices = @transform_5, window_bounds = array<i64: 128, 128>}, {pipeline_mode = #tpu.pipeline_mode<synchronous>, transform_indices = @transform_6, window_bounds = array<i64: 1, 128>}, {transform_indices = @transform_7, window_bounds = array<i64: 8, 128>}]} {
    %c0 = arith.constant 0 : index
    %c0_0 = arith.constant 0 : index
    %0 = vector.load %arg1[%c0, %c0_0] : memref<8x128xf32, #tpu.memory_space<vmem>>, vector<8x128xf32>
    %c0_1 = arith.constant 0 : index
    %c0_2 = arith.constant 0 : index
    %1 = vector.load %arg2[%c0_1, %c0_2] : memref<128x128xf32, #tpu.memory_space<vmem>>, vector<128x128xf32>
    %cst = arith.constant dense<0.000000e+00> : vector<8x128xf32>
    %2 = tpu.matmul %0, %1, %cst {dimension_numbers = #tpu.dot_dimension_numbers<[1], [0], [0], [1], [0, 0, 1, 1], [], []>} : vector<8x128xf32>, vector<128x128xf32>, vector<8x128xf32> -> vector<8x128xf32>
    %c0_3 = arith.constant 0 : index
    %c0_4 = arith.constant 0 : index
    %3 = vector.load %arg3[%c0_3, %c0_4] : memref<1x128xf32, #tpu.memory_space<vmem>>, vector<1x128xf32>
    %4 = vector.broadcast %3 : vector<1x128xf32> to vector<8x128xf32>
    %5 = arith.addf %2, %4 : vector<8x128xf32>
    %c0_5 = arith.constant 0 : index
    %c0_6 = arith.constant 0 : index
    %6 = vector.load %arg4[%c0_5, %c0_6] : memref<1x128xf32, #tpu.memory_space<vmem>>, vector<1x128xf32>
    %c0_7 = arith.constant 0 : index
    %c0_8 = arith.constant 0 : index
    %7 = vector.load %arg5[%c0_7, %c0_8] : memref<1x128xf32, #tpu.memory_space<vmem>>, vector<1x128xf32>
    %cst_9 = arith.constant dense<0.000000e+00> : vector<8xf32>
    %8 = vector.multi_reduction <add>, %5, %cst_9 [1] : vector<8x128xf32> to vector<8xf32>
    %9 = vector.shape_cast %8 : vector<8xf32> to vector<8x1xf32>
    %cst_10 = arith.constant 3.125000e-02 : f32
    %10 = vector.broadcast %cst_10 : f32 to vector<8x1xf32>
    %11 = arith.mulf %9, %10 : vector<8x1xf32>
    %12 = vector.broadcast %11 : vector<8x1xf32> to vector<8x128xf32>
    %13 = arith.subf %5, %12 : vector<8x128xf32>
    %14 = tpu.iota {dimensions = array<i32: 1>} : vector<8x128xi32>
    %c32_i32 = arith.constant 32 : i32
    %15 = vector.broadcast %c32_i32 : i32 to vector<8x128xi32>
    %16 = arith.cmpi slt, %14, %15 : vector<8x128xi32>
    %cst_11 = arith.constant 0.000000e+00 : f32
    %17 = vector.broadcast %cst_11 : f32 to vector<8x128xf32>
    %18 = arith.select %16, %13, %17 : vector<8x128xi1>, vector<8x128xf32>
    %19 = arith.mulf %18, %18 : vector<8x128xf32>
    %cst_12 = arith.constant dense<0.000000e+00> : vector<8xf32>
    %20 = vector.multi_reduction <add>, %19, %cst_12 [1] : vector<8x128xf32> to vector<8xf32>
    %21 = vector.shape_cast %20 : vector<8xf32> to vector<8x1xf32>
    %cst_13 = arith.constant 3.125000e-02 : f32
    %22 = vector.broadcast %cst_13 : f32 to vector<8x1xf32>
    %23 = arith.mulf %21, %22 : vector<8x1xf32>
    %cst_14 = arith.constant 9.99999974E-6 : f32
    %24 = vector.broadcast %cst_14 : f32 to vector<8x1xf32>
    %25 = arith.addf %23, %24 : vector<8x1xf32>
    %26 = math.rsqrt %25 : vector<8x1xf32>
    %27 = vector.broadcast %26 : vector<8x1xf32> to vector<8x128xf32>
    %28 = arith.mulf %18, %27 : vector<8x128xf32>
    %29 = vector.broadcast %6 : vector<1x128xf32> to vector<8x128xf32>
    %30 = arith.mulf %28, %29 : vector<8x128xf32>
    %31 = vector.broadcast %7 : vector<1x128xf32> to vector<8x128xf32>
    %32 = arith.addf %30, %31 : vector<8x128xf32>
    %cst_15 = arith.constant 5.000000e-01 : f32
    %33 = vector.broadcast %cst_15 : f32 to vector<8x128xf32>
    %34 = arith.mulf %33, %32 : vector<8x128xf32>
    %cst_16 = arith.constant 0.707106769 : f32
    %35 = vector.broadcast %cst_16 : f32 to vector<8x128xf32>
    %36 = arith.mulf %32, %35 : vector<8x128xf32>
    %37 = math.erf %36 : vector<8x128xf32>
    %cst_17 = arith.constant 1.000000e+00 : f32
    %38 = vector.broadcast %cst_17 : f32 to vector<8x128xf32>
    %39 = arith.addf %38, %37 : vector<8x128xf32>
    %40 = arith.mulf %34, %39 : vector<8x128xf32>
    %c0_18 = arith.constant 0 : index
    %c0_19 = arith.constant 0 : index
    %41 = vector.load %arg6[%c0_18, %c0_19] : memref<128x128xf32, #tpu.memory_space<vmem>>, vector<128x128xf32>
    %cst_20 = arith.constant dense<0.000000e+00> : vector<8x128xf32>
    %42 = tpu.matmul %40, %41, %cst_20 {dimension_numbers = #tpu.dot_dimension_numbers<[1], [0], [0], [1], [0, 0, 1, 1], [], []>} : vector<8x128xf32>, vector<128x128xf32>, vector<8x128xf32> -> vector<8x128xf32>
    %c0_21 = arith.constant 0 : index
    %c0_22 = arith.constant 0 : index
    %43 = vector.load %arg7[%c0_21, %c0_22] : memref<1x128xf32, #tpu.memory_space<vmem>>, vector<1x128xf32>
    %44 = vector.broadcast %43 : vector<1x128xf32> to vector<8x128xf32>
    %45 = arith.addf %42, %44 : vector<8x128xf32>
    %c0_23 = arith.constant 0 : index
    %c0_24 = arith.constant 0 : index
    %46 = vector.load %arg8[%c0_23, %c0_24] : memref<8x128xf32, #tpu.memory_space<vmem>>, vector<8x128xf32>
    tpu.vector_store %arg8[%c0_23, %c0_24], %45 {strides = array<i32>} : memref<8x128xf32, #tpu.memory_space<vmem>>, vector<8x128xf32>,
    return
  }
  func.func @transform_0(%arg0: i32) -> (i32, i32) {
    %c0_i32 = arith.constant 0 : i32
    %c0_i32_0 = arith.constant 0 : i32
    return %arg0, %c0_i32 : i32, i32
  }
  func.func @transform_1(%arg0: i32) -> (i32, i32) {
    %c0_i32 = arith.constant 0 : i32
    %c0_i32_0 = arith.constant 0 : i32
    %c0_i32_1 = arith.constant 0 : i32
    return %c0_i32, %c0_i32_0 : i32, i32
  }
  func.func @transform_2(%arg0: i32) -> (i32, i32) {
    %c0_i32 = arith.constant 0 : i32
    %c0_i32_0 = arith.constant 0 : i32
    %c0_i32_1 = arith.constant 0 : i32
    return %c0_i32, %c0_i32_0 : i32, i32
  }
  func.func @transform_3(%arg0: i32) -> (i32, i32) {
    %c0_i32 = arith.constant 0 : i32
    %c0_i32_0 = arith.constant 0 : i32
    %c0_i32_1 = arith.constant 0 : i32
    return %c0_i32, %c0_i32_0 : i32, i32
  }
  func.func @transform_4(%arg0: i32) -> (i32, i32) {
    %c0_i32 = arith.constant 0 : i32
    %c0_i32_0 = arith.constant 0 : i32
    %c0_i32_1 = arith.constant 0 : i32
    return %c0_i32, %c0_i32_0 : i32, i32
  }
  func.func @transform_5(%arg0: i32) -> (i32, i32) {
    %c0_i32 = arith.constant 0 : i32
    %c0_i32_0 = arith.constant 0 : i32
    %c0_i32_1 = arith.constant 0 : i32
    return %c0_i32, %c0_i32_0 : i32, i32
  }
  func.func @transform_6(%arg0: i32) -> (i32, i32) {
    %c0_i32 = arith.constant 0 : i32
    %c0_i32_0 = arith.constant 0 : i32
    %c0_i32_1 = arith.constant 0 : i32
    return %c0_i32, %c0_i32_0 : i32, i32
  }
  func.func @transform_7(%arg0: i32) -> (i32, i32) {
    %c0_i32 = arith.constant 0 : i32
    %c0_i32_0 = arith.constant 0 : i32
    return %arg0, %c0_i32 : i32, i32
  }
}

</mosaic_0001>

<bundles_post_ra>
// kernel: tpu_custom_call.1
= control target key start
LH: loop header
LB: loop body
LE: loop exit
PB: predicated region body
PF: predicated region fallthrough
CT: control target
= control target key end

     0   :  { %12 = vsyncpa [#allocation3], 0  ;;  %s700_s0 = inlined_call_operand.hbm [shape: f32[8,128], index: 0, kind: input, shape index: {}]   ;;  %s701_s1 = inlined_call_operand.hbm [shape: f32[128,128], index: 1, kind: input, shape index: {}]   ;;  %s702_s2 = inlined_call_operand.vmem [shape: f32[1,128], index: 2, kind: input, shape index: {}]   ;;  %s703_s3 = inlined_call_operand.vmem [shape: f32[1,128], index: 3, kind: input, shape index: {}]   ;;  %s704_s4 = inlined_call_operand.vmem [shape: f32[1,128], index: 4, kind: input, shape index: {}]   ;;  %s705_s5 = inlined_call_operand.hbm [shape: f32[128,128], index: 5, kind: input, shape index: {}]   ;;  %s706_s6 = inlined_call_operand.vmem [shape: f32[1,128], index: 6, kind: input, shape index: {}]   ;;  %s707_s7 = inlined_call_operand.hbm [shape: f32[8,128], index: 7, kind: output, shape index: {}]  }
   0x1   :  { %13 = vsyncpa [#allocation6], 0 }
   0x2   :  { %14 = vsyncpa [#allocation4], 0  ;;  %s569_s24 = smov [#allocation5]   ;;  %s475_s28 = scalar_lea.hbm %s701_s1, 2048 }
   0x3   :  { %s30_s25 = sshll.u32 %s569_s24, 4  ;;  %p476_p0 = scmp.ne.s32.totalorder %s701_s1, %s475_s28  ;;  %s31_s25 = int_to_ptr.vmem [resolvable:$true] %s30_s25 }
   0x4   :  { %p479_p1 = scmp.lt.u32.totalorder %s475_s28, %s701_s1 }
   0x6   :  { %p481_p2 = pnand %p479_p1, %p476_p0 }
   0x8   :  { %484 = shalt.err (!%p481_p2)
}
   0x9   :  { %s485_s10 = scalar_lea.vmem %s31_s25, 2048  ;;  %p490_p4 = scmp.lt.s32.totalorder %s31_s25, %s31_s25 }
   0xa   :  { %p486_p3 = scmp.ne.s32.totalorder %s31_s25, %s485_s10  ;;  %p491_p5 = scmp.lt.s32.totalorder %s485_s10, %s485_s10 }
   0xc   :  { %p492_p6 = por %p491_p5, %p490_p4 }
   0xe   :  { %p493_p7 = pnand %p492_p6, %p486_p3 }
  0x10   :  { %496 = shalt.err (!%p493_p7)
}
  0x11   :  { %s570_s11 = smov 128   ;;  %s571_s12 = smov 8  }
  0x12   :  { %36 = dma.hbm_to_vmem [thread:$0]  %s701_s1, 2048, %s31_s25, [#allocation6], %s570_s11, %s570_s11, %s571_s12  }
  0x13   :  { %s572_s15 = smov [#allocation2]   ;;  %s573_s17 = smov [#allocation7]  }
  0x14   :  { %s21_s16 = sshll.u32 %s572_s15, 4  ;;  %s48_s18 = sshll.u32 %s573_s17, 4  ;;  %s22_s16 = int_to_ptr.vmem [resolvable:$true] %s21_s16  ;;  %s49_s18 = int_to_ptr.vmem [resolvable:$true] %s48_s18 }
  0x15   :  { %s497_s21 = scalar_lea.hbm %s700_s0, 128 }
  0x16   :  { %p498_p8 = scmp.ne.s32.totalorder %s700_s0, %s497_s21  ;;  %p501_p9 = scmp.lt.u32.totalorder %s497_s21, %s700_s0 }
  0x18   :  { %p503_p10 = pnand %p501_p9, %p498_p8 }
  0x1a   :  { %506 = shalt.err (!%p503_p10)
}
  0x1b   :  { %s507_s1 = scalar_lea.vmem %s22_s16, 128  ;;  %p512_p12 = scmp.lt.s32.totalorder %s22_s16, %s22_s16 }
  0x1c   :  { %p508_p11 = scmp.ne.s32.totalorder %s22_s16, %s507_s1  ;;  %p513_p13 = scmp.lt.s32.totalorder %s507_s1, %s507_s1 }
  0x1e   :  { %p514_p0 = por %p513_p13, %p512_p12 }
  0x20   :  { %p515_p1 = pnand %p514_p0, %p508_p11 }
  0x22   :  { %518 = shalt.err (!%p515_p1)
}
  0x23   :  { %24 = dma.hbm_to_vmem [thread:$0]  %s700_s0, 128, %s22_s16, [#allocation3]  }
  0x24   :  { %s519_s30 = scalar_lea.hbm %s705_s5, 2048 }
  0x25   :  { %p520_p2 = scmp.ne.s32.totalorder %s705_s5, %s519_s30  ;;  %p523_p3 = scmp.lt.u32.totalorder %s519_s30, %s705_s5 }
  0x27   :  { %p525_p4 = pnand %p523_p3, %p520_p2 }
  0x29   :  { %528 = shalt.err (!%p525_p4)
}
  0x2a   :  { %s529_s14 = scalar_lea.vmem %s49_s18, 2048  ;;  %p534_p6 = scmp.lt.s32.totalorder %s49_s18, %s49_s18 }
  0x2b   :  { %p530_p5 = scmp.ne.s32.totalorder %s49_s18, %s529_s14  ;;  %p535_p7 = scmp.lt.s32.totalorder %s529_s14, %s529_s14 }
  0x2d   :  { %p536_p8 = por %p535_p7, %p534_p6 }
  0x2f   :  { %p537_p9 = pnand %p536_p8, %p530_p5 }
  0x31   :  { %540 = shalt.err (!%p537_p9)
}
  0x32   :  { %54 = dma.hbm_to_vmem [thread:$0]  %s705_s5, 2048, %s49_s18, [#allocation6], %s570_s11, %s570_s11, %s571_s12  }
  0x33   :  { %563 = dma.done.wait [#allocation3], 128  }
  0x34   :  { %564 = vsyncadd [#allocation3], 4294967168 }
  0x35   :  { %565 = dma.done.wait [#allocation6], 4096  }
  0x36   :  { %566 = vsyncadd [#allocation6], 4294963200  ;;  %v574_v0 = vmov 0.0|0.0   ;;  %vm575_vm0 = vmmov 0   ;;  %v576_v1 = vmov 0.0   ;;  %v67_v2 = vld [vmem:[#allocation5] sm:$0xff]  ;;  %v166_v31 = vlaneseq }
  0x37   :  { %414 = vmatprep.subr.bf16.mxu0 %v574_v0  ;;  %376 = vmatprep.mubr.msk.f32.mxu0 %vm575_vm0, %v576_v1  ;;  %v68_v3 = vld [vmem:[#allocation5 + $0x8] sm:$0xff]  ;;  %v69_v4 = vld [vmem:[#allocation5 + $0x10] sm:$0xff]  ;;  %v70_v6 = vld [vmem:[#allocation5 + $0x18] sm:$0xff]  ;;  %s577_s20 = smov [#allocation8]  }
  0x38   :  { %438 = vmatprep.subr.bf16.mxu1 %v574_v0  ;;  %411 = vmatprep.mubr.msk.f32.mxu1 %vm575_vm0, %v576_v1  ;;  %v415_v5 = vpack.c.bf16 %v68_v3, %v67_v2  ;;  %v418_v7 = vpack.c.bf16 %v70_v6, %v69_v4  ;;  %v71_v8 = vld [vmem:[#allocation5 + $0x20] sm:$0xff]  ;;  %v72_v9 = vld [vmem:[#allocation5 + $0x28] sm:$0xff]  ;;  %v73_v11 = vld [vmem:[#allocation5 + $0x30] sm:$0xff]  ;;  %v167_v32 = vand.u32 127, %v166_v31 }
  0x39   :  { %v421_v10 = vpack.c.bf16 %v72_v9, %v71_v8  ;;  %v74_v12 = vld [vmem:[#allocation5 + $0x38] sm:$0xff]  ;;  %v75_v14 = vld [vmem:[#allocation5 + $0x40] sm:$0xff]  ;;  %v76_v15 = vld [vmem:[#allocation5 + $0x48] sm:$0xff] }
  0x3a   :  { %416 = vmatpush3.bf16.msra.mxu0 %v415_v5  ;;  %v424_v13 = vpack.c.bf16 %v74_v12, %v73_v11  ;;  %v427_v16 = vpack.c.bf16 %v76_v15, %v75_v14  ;;  %v77_v17 = vld [vmem:[#allocation5 + $0x50] sm:$0xff]  ;;  %v78_v18 = vld [vmem:[#allocation5 + $0x58] sm:$0xff]  ;;  %v79_v20 = vld [vmem:[#allocation5 + $0x60] sm:$0xff]  ;;  %vm168_vm1 = vcmp.lt.s32.totalorder %v167_v32, 32 }
  0x3b   :  { %417 = vmatprep.subr.bf16.mxu0 %v574_v0  ;;  %v430_v19 = vpack.c.bf16 %v78_v18, %v77_v17  ;;  %v80_v21 = vld [vmem:[#allocation5 + $0x68] sm:$0xff]  ;;  %v81_v23 = vld [vmem:[#allocation5 + $0x70] sm:$0xff]  ;;  %v82_v24 = vld [vmem:[#allocation5 + $0x78] sm:$0xff] }
  0x3c   :  { %v433_v22 = vpack.c.bf16 %v80_v21, %v79_v20  ;;  %v436_v25 = vpack.c.bf16 %v82_v24, %v81_v23  ;;  %v66_v26 = vld [vmem:[#allocation2] sm:$0xff]  ;;  %v196_v38 = vld [vmem:[#allocation7] sm:$0xff]  ;;  %v197_v39 = vld [vmem:[#allocation7 + $0x8] sm:$0xff] }
  0x3d   :  { %v306_v27 = vld [vmem:[%s702_s2] ss:$0 sm:$0xff]  ;;  %v439_v40 = vpack.c.bf16 %v197_v39, %v196_v38  ;;  %v198_v41 = vld [vmem:[#allocation7 + $0x10] sm:$0xff]  ;;  %v200_v44 = vld [vmem:[#allocation7 + $0x20] sm:$0xff] }
  0x3e   :  { %419 = vmatpush3.bf16.msra.mxu0 %v418_v7  ;;  %v199_v42 = vld [vmem:[#allocation7 + $0x18] sm:$0xff]  ;;  %v201_v45 = vld [vmem:[#allocation7 + $0x28] sm:$0xff]  ;;  %v202_v47 = vld [vmem:[#allocation7 + $0x30] sm:$0xff] }
  0x3f   :  { %420 = vmatprep.subr.bf16.mxu0 %v574_v0  ;;  %440 = vmatpush3.bf16.msra.mxu1 %v439_v40  ;;  %v442_v43 = vpack.c.bf16 %v199_v42, %v198_v41  ;;  %v445_v46 = vpack.c.bf16 %v201_v45, %v200_v44  ;;  %v203_v48 = vld [vmem:[#allocation7 + $0x38] sm:$0xff]  ;;  %v204_v50 = vld [vmem:[#allocation7 + $0x40] sm:$0xff]  ;;  %v205_v51 = vld [vmem:[#allocation7 + $0x48] sm:$0xff] }
  0x40   :  { %441 = vmatprep.subr.bf16.mxu1 %v574_v0  ;;  %v448_v49 = vpack.c.bf16 %v203_v48, %v202_v47  ;;  %v451_v52 = vpack.c.bf16 %v205_v51, %v204_v50  ;;  %v206_v53 = vld [vmem:[#allocation7 + $0x50] sm:$0xff]  ;;  %v207_v54 = vld [vmem:[#allocation7 + $0x58] sm:$0xff]  ;;  %v208_v56 = vld [vmem:[#allocation7 + $0x60] sm:$0xff] }
  0x41   :  { %v454_v55 = vpack.c.bf16 %v207_v54, %v206_v53  ;;  %v209_v57 = vld [vmem:[#allocation7 + $0x68] sm:$0xff]  ;;  %v210_v59 = vld [vmem:[#allocation7 + $0x70] sm:$0xff]  ;;  %v211_v60 = vld [vmem:[#allocation7 + $0x78] sm:$0xff] }
  0x42   :  { %422 = vmatpush3.bf16.msra.mxu0 %v421_v10  ;;  %v457_v58 = vpack.c.bf16 %v209_v57, %v208_v56  ;;  %v460_v61 = vpack.c.bf16 %v211_v60, %v210_v59  ;;  %v307_v3 = vld [vmem:[%s703_s3] ss:$0 sm:$0xff]  ;;  %s296_s3 = sshll.u32 %s577_s20, 4  ;;  %s297_s3 = int_to_ptr.vmem [resolvable:$true] %s296_s3 }
  0x43   :  { %423 = vmatprep.subr.bf16.mxu0 %v574_v0  ;;  %443 = vmatpush3.bf16.msra.mxu1 %v442_v43  ;;  %v308_v5 = vld [vmem:[%s704_s4] ss:$0 sm:$0xff]  ;;  %s541_s4 = scalar_lea.vmem %s297_s3, 128  ;;  %p546_p11 = scmp.lt.s32.totalorder %s297_s3, %s297_s3 }
  0x44   :  { %444 = vmatprep.subr.bf16.mxu1 %v574_v0  ;;  %v309_v12 = vld [vmem:[%s706_s6] ss:$0 sm:$0xff]  ;;  %p542_p10 = scmp.ne.s32.totalorder %s297_s3, %s541_s4  ;;  %p547_p12 = scmp.lt.s32.totalorder %s541_s4, %s541_s4 }
  0x46   :  { %425 = vmatpush3.bf16.msra.mxu0 %v424_v13  ;;  %p548_p13 = por %p547_p12, %p546_p11 }
  0x47   :  { %426 = vmatprep.subr.bf16.mxu0 %v574_v0  ;;  %446 = vmatpush3.bf16.msra.mxu1 %v445_v46 }
  0x48   :  { %447 = vmatprep.subr.bf16.mxu1 %v574_v0  ;;  %p549_p0 = pnand %p548_p13, %p542_p10 }
  0x4a   :  { %428 = vmatpush3.bf16.msra.mxu0 %v427_v16 }
  0x4b   :  { %429 = vmatprep.subr.bf16.mxu0 %v574_v0  ;;  %449 = vmatpush3.bf16.msra.mxu1 %v448_v49 }
  0x4c   :  { %450 = vmatprep.subr.bf16.mxu1 %v574_v0 }
  0x4e   :  { %431 = vmatpush3.bf16.msra.mxu0 %v430_v19 }
  0x4f   :  { %432 = vmatprep.subr.bf16.mxu0 %v574_v0  ;;  %452 = vmatpush3.bf16.msra.mxu1 %v451_v52 }
  0x50   :  { %453 = vmatprep.subr.bf16.mxu1 %v574_v0 }
  0x52   :  { %434 = vmatpush3.bf16.msra.mxu0 %v433_v22 }
  0x53   :  { %435 = vmatprep.subr.bf16.mxu0 %v574_v0  ;;  %455 = vmatpush3.bf16.msra.mxu1 %v454_v55 }
  0x54   :  { %456 = vmatprep.subr.bf16.mxu1 %v574_v0 }
  0x56   :  { %437 = vmatpush3.bf16.msra.mxu0 %v436_v25 }
  0x57   :  { %458 = vmatpush3.bf16.msra.mxu1 %v457_v58 }
  0x58   :  { %459 = vmatprep.subr.bf16.mxu1 %v574_v0 }
  0x59   :  { %377 = vmatmul.mubr.f32.vlgmr.msra.gmra.mrb[0].mxu0 %v66_v26 }
  0x5b   :  { %461 = vmatpush3.bf16.msra.mxu1 %v460_v61 }
 0x12c   :  { %v156_v28 = vpop.f32.mrb[0].mxu0 }
 0x12d   :  { %v157_v29 = vadd.f32 %v306_v27, %v156_v28  ;;  %v378_v30 = vpop.f32.mrb[1].mxu0 }
 0x12f   :  { %162 = vadd.xlane.f32.xlu0 %v157_v29 }
 0x1bc   :  { %v163_v33 = vpop.xlane.xlu0 %162 }
 0x1bd   :  { %v164_v34 = vmul.f32 0.03125, %v163_v33 }
 0x1bf   :  { %v165_v35 = vsub.f32 %v157_v29, %v164_v34 }
 0x1c1   :  { %v169_v36 = vsel %vm168_vm1, %v165_v35, 0.0 }
 0x1c2   :  { %v170_v37 = vmul.f32 %v169_v36, %v169_v36 }
 0x1c4   :  { %171 = vadd.xlane.f32.xlu0 %v170_v37 }
 0x251   :  { %v172_v62 = vpop.xlane.xlu0 %171 }
 0x252   :  { %v173_v63 = vmul.f32 0.03125, %v172_v62 }
 0x254   :  { %v174_v1 = vadd.f32 1e-05, %v173_v63 }
 0x256   :  { %471 = vrsqrt.f32 %v174_v1 }
 0x260   :  { %v472_v2 = vpop.eup %471 }
 0x261   :  { %v176_v4 = vmul.f32 %v472_v2, %v169_v36 }
 0x263   :  { %v183_v6 = vmul.f32 %v307_v3, %v176_v4 }
 0x265   :  { %v190_v7 = vadd.f32 %v308_v5, %v183_v6 }
 0x267   :  { %v192_v8 = vmul.f32 0.70710677, %v190_v7  ;;  %v191_v9 = vmul.f32 0.5, %v190_v7 }
 0x269   :  { %473 = verf.f32 %v192_v8 }
 0x273   :  { %v474_v0 = vpop.eup %473 }
 0x274   :  { %v194_v10 = vadd.f32 1.0, %v474_v0 }
 0x276   :  { %v195_v11 = vmul.f32 %v194_v10, %v191_v9 }
 0x278   :  { %412 = vmatmul.mubr.f32.vlgmr.msra.gmra.mrb[0].mxu1 %v195_v11 }
 0x34b   :  { %v285_v13 = vpop.f32.mrb[0].mxu1 }
 0x34c   :  { %v286_v14 = vadd.f32 %v309_v12, %v285_v13  ;;  %v413_v15 = vpop.f32.mrb[1].mxu1 }
 0x34e   :  { %289 = vst [vmem:[#allocation8] sm:$0xff] %v286_v14 }
 0x34f   :  { %552 = shalt.err (!%p549_p0)
}
 0x350   :  { %s553_s23 = scalar_lea.hbm %s707_s7, 128 }
 0x351   :  { %p554_p1 = scmp.ne.s32.totalorder %s707_s7, %s553_s23  ;;  %p557_p2 = scmp.lt.u32.totalorder %s553_s23, %s707_s7 }
 0x353   :  { %p559_p3 = pnand %p557_p2, %p554_p1 }
 0x355   :  { %562 = shalt.err (!%p559_p3)
}
 0x356   :  { %299 = dma.vmem_to_hbm [thread:$0]  %s297_s3, 128, %s707_s7, [#allocation4]  }
 0x357   :  { %567 = dma.done.wait [#allocation4], 128  }
 0x358   :  { %568 = vsyncadd [#allocation4], 4294967168 }
 0x359   :  { %303 = vsyncpa [#allocation3], 1 }
 0x35a   :  { %304 = vsyncpa [#allocation6], 1 }
 0x35b   :  { %305 = vsyncpa [#allocation4], 1 }

</bundles_post_ra>
